<compile_context>
chip_gen: v5e
topology: v5e:2x2
jax: 0.10.0
libtpu: 0.0.40
codegen_flags: <defaults>
</compile_context>

<pallas_src>
import jax
import jax.numpy as jnp
from jax.experimental import pallas as pl
from jax.experimental.pallas import tpu as pltpu


# ---------------------------------------------------------------------------
# Kernel 1: weighted Vandermonde, lane-dense layout  [B, 4, N] -> [B, 9, N]
# ---------------------------------------------------------------------------
def _vandermonde_kernel(p_ref, w_ref, out_ref):
    p = p_ref[0]                       # [4, TN] f32  (rows: x, y, u, v)
    w = w_ref[0]                       # [1, TN] f32
    x = p[0:1, :]
    y = p[1:2, :]
    u = p[2:3, :]
    v = p[3:4, :]
    wx = w * x
    wy = w * y
    wu = w * u
    wv = w * v
    out_ref[0] = jnp.concatenate(
        (wx * u, wx * v, wx,
         wy * u, wy * v, wy,
         wu, wv, w), axis=0)           # [9, TN]  (weight folded into every row)


def _pick_tile_n(n):
    if n % 128 == 0:
        for t in (1024, 512, 256, 128):
            if n % t == 0:
                return t
    return n   # small / unaligned N: full extent is still a legal block


def weighted_vandermonde_t(p2d2d_n, weights):
    """Weighted Vandermonde system, transposed: returns [B, 9, N]."""
    B, N, _ = p2d2d_n.shape
    p_t = jnp.swapaxes(p2d2d_n.astype(jnp.float32), -1, -2)     # [B, 4, N]
    w3 = weights.astype(jnp.float32).reshape(B, 1, N)           # [B, 1, N]
    tile_n = _pick_tile_n(N)
    grid = (B, N // tile_n)
    return pl.pallas_call(
        _vandermonde_kernel,
        out_shape=jax.ShapeDtypeStruct((B, 9, N), jnp.float32),
        grid=grid,
        in_specs=[pl.BlockSpec((1, 4, tile_n), lambda b, n: (b, 0, n)),
                  pl.BlockSpec((1, 1, tile_n), lambda b, n: (b, 0, n))],
        out_specs=pl.BlockSpec((1, 9, tile_n), lambda b, n: (b, 0, n)),
        compiler_params=pltpu.CompilerParams(
            dimension_semantics=("parallel", "parallel")),
    )(p_t, w3)


# ---------------------------------------------------------------------------
# Kernel 2: single-launch batched 3x3 chain  E = L^T @ F @ R  (VPU only)
# ---------------------------------------------------------------------------
def _essential_kernel(lt_ref, f_ref, r_ref, e_ref):
    Lt = lt_ref[...]       # [B, 3, 3]  (already transposed in the wrapper)
    F = f_ref[...]         # [B, 3, 3]
    R = r_ref[...]         # [B, 3, 3]
    # M1 = F @ R, contraction unrolled into broadcast multiply-adds (no MXU).
    M1 = (F[:, :, 0:1] * R[:, 0:1, :] +
          F[:, :, 1:2] * R[:, 1:2, :] +
          F[:, :, 2:3] * R[:, 2:3, :])
    # E = Lt @ M1
    E = (Lt[:, :, 0:1] * M1[:, 0:1, :] +
         Lt[:, :, 1:2] * M1[:, 1:2, :] +
         Lt[:, :, 2:3] * M1[:, 2:3, :])
    e_ref[...] = E


def essential_batched(lt, f_raw, r):
    B = f_raw.shape[0]
    vmem = pl.BlockSpec(memory_space=pltpu.MemorySpace.VMEM)
    return pl.pallas_call(
        _essential_kernel,
        out_shape=jax.ShapeDtypeStruct((B, 3, 3), jnp.float32),
        in_specs=[vmem, vmem, vmem],
        out_specs=vmem,
    )(lt, f_raw, r)


# ---------------------------------------------------------------------------
# Module wrapper (mirrors the PyTorch forward)
# ---------------------------------------------------------------------------
class EssentialMatrixSolver:
    def __init__(self, k_matrix):
        self._k_matrix = jnp.asarray(k_matrix, dtype=jnp.float32)

    def __call__(self, batch):
        p2d2d_n = jnp.asarray(batch['p2d2d_n'])
        weights = jnp.asarray(batch['weights_2d2d'])
        B = p2d2d_n.shape[0]

        # Pallas kernel 1: lane-dense weighted Vandermonde, transposed [B,9,N].
        wv_t = weighted_vandermonde_t(p2d2d_n, weights)

        # TODO(synk): torch.svd has no Pallas equivalent; batched jnp.linalg.svd
        # replaces the per-sample Python loop.  Left singular vectors of M^T are
        # the right singular vectors of M, so no extra transpose is needed
        # (results may differ from torch by a global sign, as usual for SVD).
        u, s, _ = jnp.linalg.svd(wv_t, full_matrices=False)
        singular_values_vand = s                                 # [B, 9]
        fundamental_matrix_raw = u[:, :, -1].reshape(B, 3, 3)    # == torch V[:, -1]

        # Fold K (and the optional norm/denorm matrices) once, outside the kernel:
        #   E = K^T (Dn^T F Nm) K = (Dn K)^T F (Nm K) = L^T F R.
        # PyTorch applies Dn/Nm only when BOTH are present; we match that branch.
        K = self._k_matrix
        if 'norm_mat_2d' in batch and 'denorm_mat_2d' in batch:
            Dn = jnp.asarray(batch['denorm_mat_2d'], dtype=jnp.float32)
            Nm = jnp.asarray(batch['norm_mat_2d'], dtype=jnp.float32)
            L = Dn @ K
            R = Nm @ K
        else:
            L = K
            R = K
        Lt = jnp.broadcast_to(jnp.swapaxes(L, -1, -2), (B, 3, 3)).astype(jnp.float32)
        Rb = jnp.broadcast_to(R, (B, 3, 3)).astype(jnp.float32)

        # Pallas kernel 2: one launch for all B (no per-batch grid, no identities).
        essential_matrix_denorm = essential_batched(
            Lt, fundamental_matrix_raw.astype(jnp.float32), Rb)

        return {'fundamental_matrix_raw': fundamental_matrix_raw,
                'essential_matrix_denorm': essential_matrix_denorm,
                'singular_values_vand': singular_values_vand}


if __name__ == "__main__":
    key = jax.random.PRNGKey(0)
    k1, k2 = jax.random.split(key)

    B, N = 2, 16
    p2d2d_n = jax.random.normal(k1, (B, N, 4), dtype=jnp.float32)
    weights_2d2d = jax.random.uniform(k2, (B, N), dtype=jnp.float32)

    # Deterministic synthetic camera intrinsics (the module's registered buffer).
    k_matrix = jnp.array([[500.0, 0.0, 320.0],
                          [0.0, 500.0, 240.0],
                          [0.0, 0.0, 1.0]], dtype=jnp.float32)

    solver = EssentialMatrixSolver(k_matrix)
    out = solver({'p2d2d_n': p2d2d_n, 'weights_2d2d': weights_2d2d})

    f_raw = jax.block_until_ready(out['fundamental_matrix_raw'])
    e_den = jax.block_until_ready(out['essential_matrix_denorm'])
    s_val = jax.block_until_ready(out['singular_values_vand'])

    assert f_raw.shape == (B, 3, 3)
    assert e_den.shape == (B, 3, 3)
    assert s_val.shape == (B, 9)

    # --- lightweight self-checks against plain-JAX references ----------------
    x, y, u, v = (p2d2d_n[..., 0], p2d2d_n[..., 1],
                  p2d2d_n[..., 2], p2d2d_n[..., 3])
    vand_ref = jnp.stack((x * u, x * v, x, y * u, y * v, y, u, v,
                          jnp.ones_like(x)), axis=-1)
    wv_ref = weights_2d2d[..., None] * vand_ref                      # [B, N, 9]
    wv_t = jax.block_until_ready(weighted_vandermonde_t(p2d2d_n, weights_2d2d))
    assert bool(jnp.allclose(jnp.swapaxes(wv_t, -1, -2), wv_ref, atol=1e-5))

    # E = K^T F K (no norm/denorm matrices supplied -> identity branch).
    e_ref = jnp.einsum('ji,bjk,kl->bil', k_matrix, f_raw, k_matrix)
    assert bool(jnp.allclose(e_den, e_ref, rtol=1e-3, atol=1e-2))

    print("KERNEL_OK")
</pallas_src>

<mosaic_0001>
module attributes {stable_mosaic.version = 11 : i64} {
  func.func @_vandermonde_kernel(%arg0: i32, %arg1: i32, %arg2: memref<1x4x16xf32, #tpu.memory_space<vmem>>, %arg3: memref<1x1x16xf32, #tpu.memory_space<vmem>>, %arg4: memref<1x9x16xf32, #tpu.memory_space<vmem>>) attributes {dimension_semantics = [#tpu.dimension_semantics<parallel>, #tpu.dimension_semantics<parallel>], iteration_bounds = array<i64: 2, 1>, scalar_prefetch = 0 : i64, scratch_operands = 0 : i64, tpu.core_type = #tpu.core_type<tc>, window_params = [{transform_indices = @transform_0, window_bounds = array<i64: 1, 4, 16>}, {transform_indices = @transform_1, window_bounds = array<i64: 1, 1, 16>}, {transform_indices = @transform_2, window_bounds = array<i64: 1, 9, 16>}]} {
    %c0 = arith.constant 0 : index
    %c0_0 = arith.constant 0 : index
    %c0_1 = arith.constant 0 : index
    %0 = vector.load %arg2[%c0, %c0_0, %c0_1] : memref<1x4x16xf32, #tpu.memory_space<vmem>>, vector<1x4x16xf32>
    %1 = vector.shape_cast %0 : vector<1x4x16xf32> to vector<4x16xf32>
    %c0_2 = arith.constant 0 : index
    %c0_3 = arith.constant 0 : index
    %c0_4 = arith.constant 0 : index
    %2 = vector.load %arg3[%c0_2, %c0_3, %c0_4] : memref<1x1x16xf32, #tpu.memory_space<vmem>>, vector<1x1x16xf32>
    %3 = vector.shape_cast %2 : vector<1x1x16xf32> to vector<1x16xf32>
    %4 = vector.extract_strided_slice %1 {offsets = [0, 0], sizes = [1, 16], strides = [1, 1]} : vector<4x16xf32> to vector<1x16xf32>
    %5 = vector.extract_strided_slice %1 {offsets = [1, 0], sizes = [1, 16], strides = [1, 1]} : vector<4x16xf32> to vector<1x16xf32>
    %6 = vector.extract_strided_slice %1 {offsets = [2, 0], sizes = [1, 16], strides = [1, 1]} : vector<4x16xf32> to vector<1x16xf32>
    %7 = vector.extract_strided_slice %1 {offsets = [3, 0], sizes = [1, 16], strides = [1, 1]} : vector<4x16xf32> to vector<1x16xf32>
    %8 = arith.mulf %3, %4 : vector<1x16xf32>
    %9 = arith.mulf %3, %5 : vector<1x16xf32>
    %10 = arith.mulf %3, %6 : vector<1x16xf32>
    %11 = arith.mulf %3, %7 : vector<1x16xf32>
    %12 = arith.mulf %8, %6 : vector<1x16xf32>
    %13 = arith.mulf %8, %7 : vector<1x16xf32>
    %14 = arith.mulf %9, %6 : vector<1x16xf32>
    %15 = arith.mulf %9, %7 : vector<1x16xf32>
    %16 = tpu.concatenate %12, %13, %8, %14, %15, %9, %10, %11, %3 in 0 : vector<1x16xf32>, vector<1x16xf32>, vector<1x16xf32>, vector<1x16xf32>, vector<1x16xf32>, vector<1x16xf32>, vector<1x16xf32>, vector<1x16xf32>, vector<1x16xf32> -> vector<9x16xf32>
    %c0_5 = arith.constant 0 : index
    %c0_6 = arith.constant 0 : index
    %c0_7 = arith.constant 0 : index
    %17 = vector.load %arg4[%c0_5, %c0_6, %c0_7] : memref<1x9x16xf32, #tpu.memory_space<vmem>>, vector<1x9x16xf32>
    %18 = vector.shape_cast %17 : vector<1x9x16xf32> to vector<9x16xf32>
    %19 = vector.shape_cast %16 : vector<9x16xf32> to vector<1x9x16xf32>
    tpu.vector_store %arg4[%c0_5, %c0_6, %c0_7], %19 {strides = array<i32>} : memref<1x9x16xf32, #tpu.memory_space<vmem>>, vector<1x9x16xf32>,
    return
  }
  func.func @transform_0(%arg0: i32, %arg1: i32) -> (i32, i32, i32) {
    %c0_i32 = arith.constant 0 : i32
    %c0_i32_0 = arith.constant 0 : i32
    return %arg0, %c0_i32, %arg1 : i32, i32, i32
  }
  func.func @transform_1(%arg0: i32, %arg1: i32) -> (i32, i32, i32) {
    %c0_i32 = arith.constant 0 : i32
    %c0_i32_0 = arith.constant 0 : i32
    return %arg0, %c0_i32, %arg1 : i32, i32, i32
  }
  func.func @transform_2(%arg0: i32, %arg1: i32) -> (i32, i32, i32) {
    %c0_i32 = arith.constant 0 : i32
    %c0_i32_0 = arith.constant 0 : i32
    return %arg0, %c0_i32, %arg1 : i32, i32, i32
  }
}

</mosaic_0001>

<bundles_post_ra>
// kernel: tpu_custom_call.1
= control target key start
LH: loop header
LB: loop body
LE: loop exit
PB: predicated region body
PF: predicated region fallthrough
CT: control target
= control target key end

     0   :  { %7 = vsyncpa [#allocation3], 0  ;;  %s716_s0 = inlined_call_operand.hbm [shape: f32[2,4,16], index: 0, kind: input, shape index: {}]   ;;  %s717_s1 = inlined_call_operand.hbm [shape: f32[2,1,16], index: 1, kind: input, shape index: {}]   ;;  %s718_s2 = inlined_call_operand.vmem [shape: f32[2,9,16], index: 2, kind: output, shape index: {}]  }
   0x1   :  { %9 = vsyncpa [#allocation3 + $0x1], 0 }
   0x2   :  { %10 = vsyncpa [#allocation5], 0 }
   0x3   :  { %12 = vsyncpa [#allocation5 + $0x1], 0  ;;  %s616_s9 = smov 0   ;;  %s618_s10 = smov 0  }
   0x4   :  { %s620_s11 = smov 0   ;;  %s622_s12 = smov 0  }
   0x5   :  { %s624_s13 = smov 0   ;;  %s626_s14 = smov 0  }
   0x6 LB: > { %s412_s15 = sadd.s32 4294967295, %s599_s14   ;;  %s30_s16 = sadd.s32 1, %s595_s13  ;;  %s599_s14 = sphi %s626_s14, %s18_s14   ;;  %s595_s13 = sphi %s624_s13, %s725_s13   ;;  %s591_s12 = sphi %s622_s12, %s724_s12   ;;  %s587_s11 = sphi %s620_s11, %s723_s11   ;;  %s583_s10 = sphi %s618_s10, %s722_s10   ;;  %s579_s9 = sphi %s616_s9, %s721_s9  }
   0x7   : > { %p32_p0 = scmp.ge.s32.totalorder %s30_s16, 2  ;;  %s39_s17 = sadd.s32 1, %s587_s11 }
   0x8   : > { %p46_p1 = scmp.ne.s32.totalorder %s587_s11, %s583_s10  ;;  %p47_p2 = scmp.eq.s32.totalorder %s599_s14, 0 }
   0x9   : > { %s727_s16 = smov (%p32_p0, %s30_s16), 0  ;;  %p52_p4 = scmp.ne.s32.totalorder %s583_s10, %s579_s9 }
   0xa   : > { %p652_p3 = por %p47_p2, %p46_p1  ;;  %s34_s19 = ssub.s32 %s595_s13, %s727_s16 }
   0xb   : > { %p53_p5 = scmp.eq.s32.totalorder %s412_s15, 0  ;;  %p37_p6 = scmp.eq.s32.totalorder %s34_s19, 0 }
   0xc   : > { %p436_p8 = scmp.lt.s32.totalorder %s599_s14, 2  ;;  %s132_s22 = sand.u32 1, %s587_s11  }
   0xd   : > { %p659_p7 = por %p53_p5, %p52_p4  ;;  %s417_s23 = sshll.u32 %s595_s13, 2 }
   0xe   : > { %s665_s21 = scalar_select %p37_p6, %s587_s11, %s39_s17  }
   0xf   : > { %s416_s24 = sshll.u32 %s132_s22, 2  ;;  %s141_s27 = scalar_lea.hbm %s716_s0, %s417_s23 }
  0x10   : > { %s143_s28 = sshll.u32 %s141_s27, 4  ;;  %s136_s29 = scalar_lea.vmem [#allocation2], %s416_s24  ;;  %s144_s28 = int_to_ptr.hbm [resolvable:$true] %s143_s28 }
  0x11   : > { %s145_s30 = sshll.u32 %s136_s29, 4  ;;  %p430_p9 = pnand %p436_p8, %p652_p3  ;;  %s146_s30 = int_to_ptr.vmem [resolvable:$true] %s145_s30 }
  0x12   : > { %p418_p10 = scmp.ge.s32.totalorder %s599_s14, 1  ;;  %p168_p11 = scmp.lt.s32.totalorder %s599_s14, 3 }
  0x13   : > { %s133_s3 = scalar_lea.sflag [#allocation3], %s132_s22  ;;  %s159_s6 = scalar_lea.hbm %s717_s1, %s595_s13 }
  0x14   : > { %432 = dma.hbm_to_vmem [thread:$0]  (!%p430_p9), %s144_s28, 64, %s146_s30, %s133_s3  }
  0x15   : > { %p169_p12 = pnand %p418_p10, %p168_p11  ;;  %s161_s7 = sshll.u32 %s159_s6, 4  ;;  %s162_s7 = int_to_ptr.hbm [resolvable:$true] %s161_s7 }
  0x16   : > { %s155_s8 = scalar_lea.vmem [#allocation4], %s132_s22  ;;  %s153_s15 = scalar_lea.sflag [#allocation5], %s132_s22 }
  0x17   : > { %s163_s9 = sshll.u32 %s155_s8, 4  ;;  %172 = sbr.rel (%p169_p12) target bundleno = 97 (0x61), region = 28  ;;  %s164_s9 = int_to_ptr.vmem [resolvable:$true] %s163_s9 }
  0x18   : > { %435 = dma.hbm_to_vmem [thread:$0]  (!%p430_p9), %s162_s7, 16, %s164_s9, %s153_s15  }
  0x19   : > { %s174_s17 = sand.u32 (!%p169_p12), 1, %s583_s10  }
  0x1a   : > { %s419_s18 = sshll.u32 (!%p169_p12), %s174_s17, 2  ;;  %s175_s19 = scalar_lea.sflag (!%p169_p12), [#allocation3], %s174_s17 }
  0x1b   : > { %s178_s23 = scalar_lea.vmem (!%p169_p12), [#allocation2], %s419_s18 }
  0x1c   : > { %570 = dma.done.wait (%p659_p7), %s175_s19, 64  }
  0x1d   : > { %572 = vsyncadd (%p659_p7), %s175_s19, 4294967232  ;;  %s185_s24 = scalar_lea.sflag [#allocation5], %s174_s17  ;;  %s187_s25 = scalar_lea.vmem [#allocation4], %s174_s17 }
  0x1e   : > { %574 = dma.done.wait (%p659_p7), %s185_s24, 16  }
  0x1f   : > { %576 = vsyncadd (%p659_p7), %s185_s24, 4294967280  ;;  %v224_v0 = vld [vmem:[%s178_s23] sm:$0xf]  ;;  %p216_p13 = scmp.lt.s32.totalorder %s591_s12, 1  ;;  %vm300_vm0 = vcmask 122880   ;;  %vm284_vm1 = vcmask 1040384  }
  0x20   : > { %228 = vst [vmem:[#allocation1] sm:$0xff] %v224_v0  ;;  %v225_v5 = vld [vmem:[%s187_s25] sm:$0x1]  ;;  %vm286_vm2 = vcmask 1041408   ;;  %vm288_vm3 = vcmask 1042432   ;;  %vm290_vm4 = vcmask 1043456  }
  0x21   : > { %s729_s12 = smov (!%p216_p13, %s591_s12), 1  ;;  %v226_v7 = vmul.f32 %v225_v5, %v224_v0  ;;  %vm292_vm5 = vcmask 1044480   ;;  %vm294_vm6 = vcmask 1045504   ;;  %vm296_vm7 = vcmask 1046528  }
  0x22   : > { %s424_s22 = sshll.u32 %s729_s12, 4  ;;  %vm298_vm8 = vcmask 130048  }
  0x23   : > { %s694_s28 = scalar_lea.vmem %s718_s2, %s424_s22  ;;  %v267_v14 = vperm.slane %v226_v7, 0 }
  0x24   : > { %301 = vst.msk [vmem:[%s694_s28 + $0x8] sm:$0x1] %vm300_vm0, %v225_v5 }
  0x27   : > { %v230_v1 = vld [vmem:[#allocation1 + $0x1] ss:$9 sm:$0xff] }
  0x28   : > { %233 = vst [vmem:[#allocation1] sm:$0xff] %v224_v0  ;;  %v232_v10 = vmul.f32 %v230_v1, %v225_v5 }
  0x2a   : > { %v276_v23 = vperm.slane %v232_v10, 0 }
  0x2f   : > { %v235_v2 = vld [vmem:[#allocation1 + $0x2] ss:$9 sm:$0xff] }
  0x30   : > { %238 = vst [vmem:[#allocation1] sm:$0xff] %v224_v0  ;;  %v237_v18 = vmul.f32 %v235_v2, %v225_v5 }
  0x32   : > { %v279_v25 = vperm.slane %v237_v18, 0 }
  0x37   : > { %v240_v3 = vld [vmem:[#allocation1 + $0x3] ss:$9 sm:$0xff] }
  0x38   : > { %243 = vst [vmem:[#allocation1] sm:$0xff] %v224_v0  ;;  %v242_v20 = vmul.f32 %v240_v3, %v225_v5 }
  0x3a   : > { %v282_v27 = vperm.slane %v242_v20, 0 }
  0x3f   : > { %v245_v4 = vld [vmem:[#allocation1 + $0x2] ss:$9 sm:$0xff] }
  0x40   : > { %248 = vst [vmem:[#allocation1] sm:$0xff] %v224_v0  ;;  %v247_v13 = vmul.f32 %v245_v4, %v226_v7 }
  0x47   : > { %v250_v6 = vld [vmem:[#allocation1 + $0x3] ss:$9 sm:$0xff] }
  0x48   : > { %253 = vst [vmem:[#allocation1] sm:$0xff] %v224_v0  ;;  %v252_v9 = vmul.f32 %v250_v6, %v226_v7 }
  0x4a   : > { %v264_v12 = vperm.slane %v252_v9, 0 }
  0x4c   : > { %v285_v17 = vsel %vm284_vm1, %v247_v13, %v264_v12 }
  0x4d   : > { %v287_v22 = vsel %vm286_vm2, %v285_v17, %v267_v14 }
  0x4f   : > { %v255_v8 = vld [vmem:[#allocation1 + $0x2] ss:$9 sm:$0xff] }
  0x50   : > { %258 = vst [vmem:[#allocation1] sm:$0xff] %v224_v0  ;;  %v257_v11 = vmul.f32 %v255_v8, %v232_v10 }
  0x52   : > { %v270_v16 = vperm.slane %v257_v11, 0 }
  0x54   : > { %v289_v24 = vsel %vm288_vm3, %v287_v22, %v270_v16 }
  0x57   : > { %v260_v15 = vld [vmem:[#allocation1 + $0x3] ss:$9 sm:$0xff] }
  0x58   : > { %v262_v19 = vmul.f32 %v260_v15, %v232_v10 }
  0x5a   : > { %v273_v21 = vperm.slane %v262_v19, 0 }
  0x5c   : > { %v291_v26 = vsel %vm290_vm4, %v289_v24, %v273_v21 }
  0x5d   : > { %v293_v28 = vsel %vm292_vm5, %v291_v26, %v276_v23 }
  0x5e   : > { %v295_v29 = vsel %vm294_vm6, %v293_v28, %v279_v25 }
  0x5f   : > { %v297_v30 = vsel %vm296_vm7, %v295_v29, %v282_v27 }
  0x60   : > { %299 = vst.msk [vmem:[%s694_s28] sm:$0xff] %vm298_vm8, %v297_v30 }
  0x61 PF: > { %s18_s14 = sadd.s32 1, %s599_s14   ;;  %s721_s9 = smov %s583_s10 }
  0x62   : > { %p15_p0 = scmp.ge.s32.totalorder %s18_s14, 4   ;;  %s722_s10 = smov %s587_s11 }
  0x63   : > { %s723_s11 = smov %s665_s21  ;;  %s724_s12 = smov %s595_s13 }
  0x64   : > { %s725_s13 = smov %s727_s16  ;;  %17 = sbr.rel (!%p15_p0) target bundleno = 6 (0x6), region = 88 }
  0x69   :  { %329 = vsyncpa [#allocation3], 1 }
  0x6a   :  { %331 = vsyncpa [#allocation3 + $0x1], 1 }
  0x6b   :  { %332 = vsyncpa [#allocation5], 1 }
  0x6c   :  { %334 = vsyncpa [#allocation5 + $0x1], 1 }

</bundles_post_ra>
